<compile_context>
chip_gen: v5e
topology: v5e:2x2
jax: 0.10.0
libtpu: 0.0.40
codegen_flags: <defaults>
</compile_context>

<pallas_src>
import functools

import jax
import jax.numpy as jnp
from jax.experimental import pallas as pl
from jax.experimental.pallas import tpu as pltpu

FEATURES = 256
NUM_CLASSES = 10
OUT_PAD = 128          # lane-dense padded class dim (multiple of 128)
NEG_BIG = -1e30        # "minus infinity" bias for padded class columns


def _round_up(n, m):
    return ((n + m - 1) // m) * m


def fc_output_kernel(seed_ref, x_ref, w2_ref, b2_ref, w3_ref, b3_ref, o_ref):
    # ---- fc2: [TB,256]bf16 @ [256,256]bf16 -> f32, + bias, relu --------------
    h = jnp.dot(x_ref[...], w2_ref[...],
                preferred_element_type=jnp.float32) + b2_ref[...]
    h = jnp.maximum(h, 0.0)

    # ---- dropout, p=0.5, training=True (F.dropout default), scale 1/(1-p)=2 --
    # Portable counter-based hash PRNG (murmur-style finalizer) on the VPU;
    # per-tile seed so every batch tile draws an independent mask.
    seed_u = (seed_ref[0].astype(jnp.uint32)
              + pl.program_id(0).astype(jnp.uint32) * jnp.uint32(0x9E3779B1))
    r = jax.lax.broadcasted_iota(jnp.int32, h.shape, 0).astype(jnp.uint32)
    c = jax.lax.broadcasted_iota(jnp.int32, h.shape, 1).astype(jnp.uint32)
    z = r * jnp.uint32(0x9E3779B9) + c * jnp.uint32(0x85EBCA6B) + seed_u
    z = z ^ (z >> 16)
    z = z * jnp.uint32(0x7FEB352D)
    z = z ^ (z >> 15)
    z = z * jnp.uint32(0x846CA68B)
    z = z ^ (z >> 16)
    keep = z < jnp.uint32(0x80000000)          # top bit clear -> keep, p = 0.5
    h = jnp.where(keep, h * 2.0, 0.0)

    # ---- fc3: [TB,256]bf16 @ [256,128]bf16 -> f32, + padded bias -------------
    logits = jnp.dot(h.astype(jnp.bfloat16), w3_ref[...],
                     preferred_element_type=jnp.float32) + b3_ref[...]

    # ---- log_softmax over the padded class dim --------------------------------
    # Padded columns carry bias -1e30, so exp underflows to exactly 0 and the
    # normalizer equals the 10-class one.
    m = jnp.max(logits, axis=-1, keepdims=True)
    zc = logits - m
    lse = jnp.log(jnp.sum(jnp.exp(zc), axis=-1, keepdims=True))
    o_ref[...] = (zc - lse).astype(o_ref.dtype)


def _fc_output_forward(x, w2, b2, w3, b3, seed):
    """x: [B,256] f32. w2: [256,256], b2: [256], w3: [10,256], b3: [10]."""
    B = x.shape[0]
    # Batch tile: multiple of 8 sublanes; cap at 512 rows (multiple of 256 for
    # the 256-wide MXU on v6e/v7x) so VMEM stays small and tiles pipeline.
    TB = 512 if B >= 512 else _round_up(B, 8)
    padded_B = _round_up(B, TB)
    if padded_B != B:
        x = jnp.pad(x, ((0, padded_B - B), (0, 0)))

    # Operand prep (folded into the jitted wrapper): bf16 for the MXU, padded
    # lane-dense fc3 weights/bias, f32 biases.
    x_bf = x.astype(jnp.bfloat16)
    w2_t = jnp.transpose(w2).astype(jnp.bfloat16)                       # [256,256]
    w3_t = jnp.zeros((FEATURES, OUT_PAD), jnp.bfloat16)
    w3_t = w3_t.at[:, :NUM_CLASSES].set(jnp.transpose(w3).astype(jnp.bfloat16))
    b2_r = b2.reshape(1, FEATURES).astype(jnp.float32)
    b3_r = jnp.full((1, OUT_PAD), NEG_BIG, jnp.float32)
    b3_r = b3_r.at[0, :NUM_CLASSES].set(b3.astype(jnp.float32))
    seed_arr = jnp.asarray(seed, dtype=jnp.int32).reshape(1)

    flops = 2 * padded_B * FEATURES * (FEATURES + OUT_PAD)
    bytes_accessed = (x_bf.size * 2 + w2_t.size * 2 + w3_t.size * 2
                      + b2_r.size * 4 + b3_r.size * 4 + padded_B * OUT_PAD * 4)

    out = pl.pallas_call(
        fc_output_kernel,
        out_shape=jax.ShapeDtypeStruct((padded_B, OUT_PAD), jnp.float32),
        grid=(padded_B // TB,),
        in_specs=[
            pl.BlockSpec(memory_space=pltpu.MemorySpace.SMEM),          # seed
            pl.BlockSpec((TB, FEATURES), lambda i: (i, 0)),             # x tile
            pl.BlockSpec((FEATURES, FEATURES), lambda i: (0, 0)),       # w2^T
            pl.BlockSpec((1, FEATURES), lambda i: (0, 0)),              # b2
            pl.BlockSpec((FEATURES, OUT_PAD), lambda i: (0, 0)),        # w3^T (padded)
            pl.BlockSpec((1, OUT_PAD), lambda i: (0, 0)),               # b3 (padded)
        ],
        out_specs=pl.BlockSpec((TB, OUT_PAD), lambda i: (i, 0)),
        compiler_params=pltpu.CompilerParams(
            dimension_semantics=("parallel",),
            vmem_limit_bytes=32 * 1024 * 1024,
        ),
        cost_estimate=pl.CostEstimate(
            flops=flops,
            transcendentals=padded_B * (OUT_PAD + 1),
            bytes_accessed=bytes_accessed,
        ),
    )(seed_arr, x_bf, w2_t, b2_r, w3_t, b3_r)

    return out[:B, :NUM_CLASSES]


fc_output_forward = jax.jit(_fc_output_forward)


def init_params(key):
    """Deterministic init mimicking nn.Linear defaults: U(-1/sqrt(fan_in), +1/sqrt(fan_in))."""
    k1, k2, k3, k4 = jax.random.split(key, 4)
    bound = 1.0 / jnp.sqrt(256.0)
    w2 = jax.random.uniform(k1, (256, 256), jnp.float32, -bound, bound)
    b2 = jax.random.uniform(k2, (256,), jnp.float32, -bound, bound)
    w3 = jax.random.uniform(k3, (10, 256), jnp.float32, -bound, bound)
    b3 = jax.random.uniform(k4, (10,), jnp.float32, -bound, bound)
    return w2, b2, w3, b3


if __name__ == "__main__":
    key = jax.random.PRNGKey(0)
    k_param, k_x = jax.random.split(key)
    w2, b2, w3, b3 = init_params(k_param)

    B = 8  # small batch; feature dim 256 is fixed by the module
    x = jax.random.normal(k_x, (B, 256), jnp.float32)

    out = fc_output_forward(x, w2, b2, w3, b3, 1234)
    out = jax.block_until_ready(out)

    assert out.shape == (B, 10)
    assert out.dtype == jnp.float32
    assert bool(jnp.all(jnp.isfinite(out)))
    # log_softmax rows should sum (in prob space) to ~1
    assert bool(jnp.all(jnp.abs(jnp.sum(jnp.exp(out), axis=1) - 1.0) < 1e-4))

    print("KERNEL_OK")
</pallas_src>

<mosaic_0001>
module attributes {stable_mosaic.version = 11 : i64} {
  func.func @fc_output_kernel(%arg0: i32, %arg1: memref<1xi32, #tpu.memory_space<smem>>, %arg2: memref<8x256xbf16, #tpu.memory_space<vmem>>, %arg3: memref<256x256xbf16, #tpu.memory_space<vmem>>, %arg4: memref<1x256xf32, #tpu.memory_space<vmem>>, %arg5: memref<256x128xbf16, #tpu.memory_space<vmem>>, %arg6: memref<1x128xf32, #tpu.memory_space<vmem>>, %arg7: memref<8x128xf32, #tpu.memory_space<vmem>>) attributes {dimension_semantics = [#tpu.dimension_semantics<parallel>], iteration_bounds = array<i64: 1>, scalar_prefetch = 0 : i64, scratch_operands = 0 : i64, tpu.core_type = #tpu.core_type<tc>, window_params = [{transform_indices = @transform_0, window_bounds = array<i64: 1>}, {transform_indices = @transform_1, window_bounds = array<i64: 8, 256>}, {pipeline_mode = #tpu.pipeline_mode<synchronous>, transform_indices = @transform_2, window_bounds = array<i64: 256, 256>}, {pipeline_mode = #tpu.pipeline_mode<synchronous>, transform_indices = @transform_3, window_bounds = array<i64: 1, 256>}, {pipeline_mode = #tpu.pipeline_mode<synchronous>, transform_indices = @transform_4, window_bounds = array<i64: 256, 128>}, {pipeline_mode = #tpu.pipeline_mode<synchronous>, transform_indices = @transform_5, window_bounds = array<i64: 1, 128>}, {transform_indices = @transform_6, window_bounds = array<i64: 8, 128>}]} {
    %c0 = arith.constant 0 : index
    %c0_0 = arith.constant 0 : index
    %0 = vector.load %arg2[%c0, %c0_0] : memref<8x256xbf16, #tpu.memory_space<vmem>>, vector<8x256xbf16>
    %c0_1 = arith.constant 0 : index
    %c0_2 = arith.constant 0 : index
    %1 = vector.load %arg3[%c0_1, %c0_2] : memref<256x256xbf16, #tpu.memory_space<vmem>>, vector<256x256xbf16>
    %cst = arith.constant dense<0.000000e+00> : vector<8x256xf32>
    %2 = tpu.matmul %0, %1, %cst {dimension_numbers = #tpu.dot_dimension_numbers<[1], [0], [0], [1], [0, 0, 1, 1], [], []>} : vector<8x256xbf16>, vector<256x256xbf16>, vector<8x256xf32> -> vector<8x256xf32>
    %c0_3 = arith.constant 0 : index
    %c0_4 = arith.constant 0 : index
    %3 = vector.load %arg4[%c0_3, %c0_4] : memref<1x256xf32, #tpu.memory_space<vmem>>, vector<1x256xf32>
    %4 = vector.broadcast %3 : vector<1x256xf32> to vector<8x256xf32>
    %5 = arith.addf %2, %4 : vector<8x256xf32>
    %cst_5 = arith.constant 0.000000e+00 : f32
    %6 = vector.broadcast %cst_5 : f32 to vector<8x256xf32>
    %7 = arith.maximumf %5, %6 : vector<8x256xf32>
    %c0_6 = arith.constant 0 : index
    %8 = memref.load %arg1[%c0_6] : memref<1xi32, #tpu.memory_space<smem>>
    %c-1640531535_i32 = arith.constant -1640531535 : i32
    %9 = arith.muli %arg0, %c-1640531535_i32 : i32
    %10 = arith.addi %8, %9 : i32
    %11 = tpu.iota {dimensions = array<i32: 0>} : vector<8x256xi32>
    %12 = tpu.iota {dimensions = array<i32: 1>} : vector<8x256xi32>
    %c-1640531527_i32 = arith.constant -1640531527 : i32
    %13 = vector.broadcast %c-1640531527_i32 : i32 to vector<8x256xi32>
    %14 = arith.muli %11, %13 : vector<8x256xi32>
    %c-2048144789_i32 = arith.constant -2048144789 : i32
    %15 = vector.broadcast %c-2048144789_i32 : i32 to vector<8x256xi32>
    %16 = arith.muli %12, %15 : vector<8x256xi32>
    %17 = arith.addi %14, %16 : vector<8x256xi32>
    %18 = vector.broadcast %10 : i32 to vector<8x256xi32>
    %19 = arith.addi %17, %18 : vector<8x256xi32>
    %c16_i32 = arith.constant 16 : i32
    %20 = vector.broadcast %c16_i32 : i32 to vector<8x256xi32>
    %21 = arith.shrui %19, %20 : vector<8x256xi32>
    %22 = arith.xori %19, %21 : vector<8x256xi32>
    %c2146121005_i32 = arith.constant 2146121005 : i32
    %23 = vector.broadcast %c2146121005_i32 : i32 to vector<8x256xi32>
    %24 = arith.muli %22, %23 : vector<8x256xi32>
    %c15_i32 = arith.constant 15 : i32
    %25 = vector.broadcast %c15_i32 : i32 to vector<8x256xi32>
    %26 = arith.shrui %24, %25 : vector<8x256xi32>
    %27 = arith.xori %24, %26 : vector<8x256xi32>
    %c-2073254261_i32 = arith.constant -2073254261 : i32
    %28 = vector.broadcast %c-2073254261_i32 : i32 to vector<8x256xi32>
    %29 = arith.muli %27, %28 : vector<8x256xi32>
    %c16_i32_7 = arith.constant 16 : i32
    %30 = vector.broadcast %c16_i32_7 : i32 to vector<8x256xi32>
    %31 = arith.shrui %29, %30 : vector<8x256xi32>
    %32 = arith.xori %29, %31 : vector<8x256xi32>
    %c-2147483648_i32 = arith.constant -2147483648 : i32
    %33 = vector.broadcast %c-2147483648_i32 : i32 to vector<8x256xi32>
    %34 = arith.cmpi ult, %32, %33 : vector<8x256xi32>
    %cst_8 = arith.constant 2.000000e+00 : f32
    %35 = vector.broadcast %cst_8 : f32 to vector<8x256xf32>
    %36 = arith.mulf %7, %35 : vector<8x256xf32>
    %cst_9 = arith.constant 0.000000e+00 : f32
    %37 = vector.broadcast %cst_9 : f32 to vector<8x256xf32>
    %38 = arith.select %34, %36, %37 : vector<8x256xi1>, vector<8x256xf32>
    %39 = arith.truncf %38 : vector<8x256xf32> to vector<8x256xbf16>
    %c0_10 = arith.constant 0 : index
    %c0_11 = arith.constant 0 : index
    %40 = vector.load %arg5[%c0_10, %c0_11] : memref<256x128xbf16, #tpu.memory_space<vmem>>, vector<256x128xbf16>
    %cst_12 = arith.constant dense<0.000000e+00> : vector<8x128xf32>
    %41 = tpu.matmul %39, %40, %cst_12 {dimension_numbers = #tpu.dot_dimension_numbers<[1], [0], [0], [1], [0, 0, 1, 1], [], []>} : vector<8x256xbf16>, vector<256x128xbf16>, vector<8x128xf32> -> vector<8x128xf32>
    %c0_13 = arith.constant 0 : index
    %c0_14 = arith.constant 0 : index
    %42 = vector.load %arg6[%c0_13, %c0_14] : memref<1x128xf32, #tpu.memory_space<vmem>>, vector<1x128xf32>
    %43 = vector.broadcast %42 : vector<1x128xf32> to vector<8x128xf32>
    %44 = arith.addf %41, %43 : vector<8x128xf32>
    %cst_15 = arith.constant dense<0xFF800000> : vector<8xf32>
    %45 = vector.multi_reduction <maximumf>, %44, %cst_15 [1] : vector<8x128xf32> to vector<8xf32>
    %46 = vector.shape_cast %45 : vector<8xf32> to vector<8x1xf32>
    %47 = vector.broadcast %46 : vector<8x1xf32> to vector<8x128xf32>
    %48 = arith.subf %44, %47 : vector<8x128xf32>
    %49 = math.exp %48 : vector<8x128xf32>
    %cst_16 = arith.constant dense<0.000000e+00> : vector<8xf32>
    %50 = vector.multi_reduction <add>, %49, %cst_16 [1] : vector<8x128xf32> to vector<8xf32>
    %51 = vector.shape_cast %50 : vector<8xf32> to vector<8x1xf32>
    %52 = math.log %51 : vector<8x1xf32>
    %53 = vector.broadcast %52 : vector<8x1xf32> to vector<8x128xf32>
    %54 = arith.subf %48, %53 : vector<8x128xf32>
    %c0_17 = arith.constant 0 : index
    %c0_18 = arith.constant 0 : index
    %55 = vector.load %arg7[%c0_17, %c0_18] : memref<8x128xf32, #tpu.memory_space<vmem>>, vector<8x128xf32>
    tpu.vector_store %arg7[%c0_17, %c0_18], %54 {strides = array<i32>} : memref<8x128xf32, #tpu.memory_space<vmem>>, vector<8x128xf32>,
    return
  }
  func.func @transform_0(%arg0: i32) -> i32 {
    %c0_i32 = arith.constant 0 : i32
    %c0_i32_0 = arith.constant 0 : i32
    return %c0_i32 : i32
  }
  func.func @transform_1(%arg0: i32) -> (i32, i32) {
    %c0_i32 = arith.constant 0 : i32
    %c0_i32_0 = arith.constant 0 : i32
    return %arg0, %c0_i32 : i32, i32
  }
  func.func @transform_2(%arg0: i32) -> (i32, i32) {
    %c0_i32 = arith.constant 0 : i32
    %c0_i32_0 = arith.constant 0 : i32
    %c0_i32_1 = arith.constant 0 : i32
    return %c0_i32, %c0_i32_0 : i32, i32
  }
  func.func @transform_3(%arg0: i32) -> (i32, i32) {
    %c0_i32 = arith.constant 0 : i32
    %c0_i32_0 = arith.constant 0 : i32
    %c0_i32_1 = arith.constant 0 : i32
    return %c0_i32, %c0_i32_0 : i32, i32
  }
  func.func @transform_4(%arg0: i32) -> (i32, i32) {
    %c0_i32 = arith.constant 0 : i32
    %c0_i32_0 = arith.constant 0 : i32
    %c0_i32_1 = arith.constant 0 : i32
    return %c0_i32, %c0_i32_0 : i32, i32
  }
  func.func @transform_5(%arg0: i32) -> (i32, i32) {
    %c0_i32 = arith.constant 0 : i32
    %c0_i32_0 = arith.constant 0 : i32
    %c0_i32_1 = arith.constant 0 : i32
    return %c0_i32, %c0_i32_0 : i32, i32
  }
  func.func @transform_6(%arg0: i32) -> (i32, i32) {
    %c0_i32 = arith.constant 0 : i32
    %c0_i32_0 = arith.constant 0 : i32
    return %arg0, %c0_i32 : i32, i32
  }
}

</mosaic_0001>

<bundles_post_ra>
// kernel: _fc_output_forward.1
= control target key start
LH: loop header
LB: loop body
LE: loop exit
PB: predicated region body
PF: predicated region fallthrough
CT: control target
= control target key end

     0   :  { %s1085_s0 = inlined_call_operand.<no memory space> [shape: s32[1], index: 0, kind: input, shape index: {}]   ;;  %s1086_s1 = inlined_call_operand.vmem [shape: bf16[8,256], index: 1, kind: input, shape index: {}]   ;;  %s1087_s2 = inlined_call_operand.vmem [shape: bf16[256,256], index: 2, kind: input, shape index: {}]   ;;  %s1088_s3 = inlined_call_operand.vmem [shape: f32[1,256], index: 3, kind: input, shape index: {}]   ;;  %s1089_s4 = inlined_call_operand.vmem [shape: bf16[256,128], index: 4, kind: input, shape index: {}]   ;;  %s1090_s5 = inlined_call_operand.vmem [shape: f32[1,128], index: 5, kind: input, shape index: {}]   ;;  %s1091_s6 = inlined_call_operand.hbm [shape: f32[8,128], index: 6, kind: output, shape index: {}]  }
   0x1   :  { %v572_v0 = vld [vmem:[%s1087_s2 + $0x70] sm:$0xf]  ;;  %v729_v1 = vld [vmem:[%s1087_s2 + $0x74] sm:$0xf0]  ;;  %v728_v5 = vld [vmem:[%s1087_s2 + $0x74] sm:$0xf] }
   0x2   :  { %v636_v2 = vld [vmem:[%s1087_s2 + $0xf0] sm:$0xf]  ;;  %v573_v3 = vor.u32 %v729_v1, %v572_v0  ;;  %v745_v4 = vld [vmem:[%s1087_s2 + $0xf4] sm:$0xf0]  ;;  %v574_v6 = vld [vmem:[%s1087_s2 + $0x78] sm:$0xf0] }
   0x3   :  { %v637_v7 = vor.u32 %v745_v4, %v636_v2  ;;  %v577_v8 = vor.u32 %v728_v5, %v574_v6  ;;  %v744_v9 = vld [vmem:[%s1087_s2 + $0xf4] sm:$0xf]  ;;  %v638_v10 = vld [vmem:[%s1087_s2 + $0xf8] sm:$0xf0]  ;;  %v564_v11 = vld [vmem:[%s1087_s2 + $0x60] sm:$0xf] }
   0x4   :  { %231 = vmatpush.bf16.msra.mxu0 %v573_v3  ;;  %v641_v12 = vor.u32 %v744_v9, %v638_v10  ;;  %v727_v13 = vld [vmem:[%s1087_s2 + $0x64] sm:$0xf0]  ;;  %v628_v14 = vld [vmem:[%s1087_s2 + $0xe0] sm:$0xf]  ;;  %v726_v18 = vld [vmem:[%s1087_s2 + $0x64] sm:$0xf] }
   0x5   :  { %v743_v15 = vld [vmem:[%s1087_s2 + $0xe4] sm:$0xf0]  ;;  %244 = vmatpush.bf16.msra.mxu1 %v637_v7  ;;  %257 = vmatpush.bf16.msra.mxu2 %v577_v8  ;;  %v565_v16 = vor.u32 %v727_v13, %v564_v11  ;;  %v566_v19 = vld [vmem:[%s1087_s2 + $0x68] sm:$0xf0]  ;;  %v742_v20 = vld [vmem:[%s1087_s2 + $0xe4] sm:$0xf] }
   0x6   :  { %v629_v17 = vor.u32 %v743_v15, %v628_v14  ;;  %270 = vmatpush.bf16.msra.mxu3 %v641_v12  ;;  %v569_v21 = vor.u32 %v726_v18, %v566_v19  ;;  %v630_v22 = vld [vmem:[%s1087_s2 + $0xe8] sm:$0xf0]  ;;  %v556_v23 = vld [vmem:[%s1087_s2 + $0x50] sm:$0xf]  ;;  %v725_v24 = vld [vmem:[%s1087_s2 + $0x54] sm:$0xf0] }
   0x7   :  { %v633_v25 = vor.u32 %v742_v20, %v630_v22  ;;  %v620_v26 = vld [vmem:[%s1087_s2 + $0xd0] sm:$0xf]  ;;  %v741_v27 = vld [vmem:[%s1087_s2 + $0xd4] sm:$0xf0]  ;;  %v724_v28 = vld [vmem:[%s1087_s2 + $0x54] sm:$0xf]  ;;  %v557_v29 = vor.u32 %v725_v24, %v556_v23 }
   0x8   :  { %232 = vmatpush.bf16.msra.mxu0 %v565_v16  ;;  %v558_v30 = vld [vmem:[%s1087_s2 + $0x58] sm:$0xf0]  ;;  %v740_v31 = vld [vmem:[%s1087_s2 + $0xd4] sm:$0xf]  ;;  %v621_v33 = vor.u32 %v741_v27, %v620_v26  ;;  %v548_v35 = vld [vmem:[%s1087_s2 + $0x40] sm:$0xf] }
   0x9   :  { %v622_v32 = vld [vmem:[%s1087_s2 + $0xd8] sm:$0xf0]  ;;  %245 = vmatpush.bf16.msra.mxu1 %v629_v17  ;;  %258 = vmatpush.bf16.msra.mxu2 %v569_v21  ;;  %v561_v34 = vor.u32 %v724_v28, %v558_v30  ;;  %v723_v36 = vld [vmem:[%s1087_s2 + $0x44] sm:$0xf0]  ;;  %v612_v37 = vld [vmem:[%s1087_s2 + $0xc0] sm:$0xf] }
   0xa   :  { %271 = vmatpush.bf16.msra.mxu3 %v633_v25  ;;  %v625_v38 = vor.u32 %v740_v31, %v622_v32  ;;  %v739_v39 = vld [vmem:[%s1087_s2 + $0xc4] sm:$0xf0]  ;;  %v722_v40 = vld [vmem:[%s1087_s2 + $0x44] sm:$0xf]  ;;  %v550_v41 = vld [vmem:[%s1087_s2 + $0x48] sm:$0xf0]  ;;  %v549_v44 = vor.u32 %v723_v36, %v548_v35 }
   0xb   :  { %v738_v42 = vld [vmem:[%s1087_s2 + $0xc4] sm:$0xf]  ;;  %v614_v43 = vld [vmem:[%s1087_s2 + $0xc8] sm:$0xf0]  ;;  %v613_v45 = vor.u32 %v739_v39, %v612_v37  ;;  %v553_v46 = vor.u32 %v722_v40, %v550_v41  ;;  %v540_v47 = vld [vmem:[%s1087_s2 + $0x30] sm:$0xf] }
   0xc   :  { %233 = vmatpush.bf16.msra.mxu0 %v557_v29  ;;  %v721_v48 = vld [vmem:[%s1087_s2 + $0x34] sm:$0xf0]  ;;  %v604_v49 = vld [vmem:[%s1087_s2 + $0xb0] sm:$0xf]  ;;  %v617_v50 = vor.u32 %v738_v42, %v614_v43  ;;  %v720_v52 = vld [vmem:[%s1087_s2 + $0x34] sm:$0xf] }
   0xd   :  { %246 = vmatpush.bf16.msra.mxu1 %v621_v33  ;;  %259 = vmatpush.bf16.msra.mxu2 %v561_v34  ;;  %v737_v51 = vld [vmem:[%s1087_s2 + $0xb4] sm:$0xf0]  ;;  %v542_v53 = vld [vmem:[%s1087_s2 + $0x38] sm:$0xf0]  ;;  %v736_v54 = vld [vmem:[%s1087_s2 + $0xb4] sm:$0xf]  ;;  %v541_v56 = vor.u32 %v721_v48, %v540_v47 }
   0xe   :  { %272 = vmatpush.bf16.msra.mxu3 %v625_v38  ;;  %v606_v55 = vld [vmem:[%s1087_s2 + $0xb8] sm:$0xf0]  ;;  %v605_v57 = vor.u32 %v737_v51, %v604_v49  ;;  %v545_v58 = vor.u32 %v720_v52, %v542_v53  ;;  %v532_v59 = vld [vmem:[%s1087_s2 + $0x20] sm:$0xf]  ;;  %v719_v60 = vld [vmem:[%s1087_s2 + $0x24] sm:$0xf0] }
   0xf   :  { %v596_v61 = vld [vmem:[%s1087_s2 + $0xa0] sm:$0xf]  ;;  %v609_v62 = vor.u32 %v736_v54, %v606_v55  ;;  %v735_v63 = vld [vmem:[%s1087_s2 + $0xa4] sm:$0xf0]  ;;  %v718_v0 = vld [vmem:[%s1087_s2 + $0x24] sm:$0xf]  ;;  %v533_v4 = vor.u32 %v719_v60, %v532_v59 }
  0x10   :  { %234 = vmatpush.bf16.msra.mxu0 %v549_v44  ;;  %v534_v1 = vld [vmem:[%s1087_s2 + $0x28] sm:$0xf0]  ;;  %v734_v2 = vld [vmem:[%s1087_s2 + $0xa4] sm:$0xf]  ;;  %v597_v5 = vor.u32 %v735_v63, %v596_v61  ;;  %v524_v7 = vld [vmem:[%s1087_s2 + $0x10] sm:$0xf] }
  0x11   :  { %247 = vmatpush.bf16.msra.mxu1 %v613_v45  ;;  %260 = vmatpush.bf16.msra.mxu2 %v553_v46  ;;  %v598_v3 = vld [vmem:[%s1087_s2 + $0xa8] sm:$0xf0]  ;;  %v537_v6 = vor.u32 %v718_v0, %v534_v1  ;;  %v717_v8 = vld [vmem:[%s1087_s2 + $0x14] sm:$0xf0]  ;;  %v588_v9 = vld [vmem:[%s1087_s2 + $0x90] sm:$0xf] }
  0x12   :  { %273 = vmatpush.bf16.msra.mxu3 %v617_v50  ;;  %v601_v10 = vor.u32 %v734_v2, %v598_v3  ;;  %v733_v11 = vld [vmem:[%s1087_s2 + $0x94] sm:$0xf0]  ;;  %v716_v12 = vld [vmem:[%s1087_s2 + $0x14] sm:$0xf]  ;;  %v526_v13 = vld [vmem:[%s1087_s2 + $0x18] sm:$0xf0]  ;;  %v525_v16 = vor.u32 %v717_v8, %v524_v7 }
  0x13   :  { %v732_v14 = vld [vmem:[%s1087_s2 + $0x94] sm:$0xf]  ;;  %v590_v15 = vld [vmem:[%s1087_s2 + $0x98] sm:$0xf0]  ;;  %v516_v17 = vld [vmem:[%s1087_s2] sm:$0xf]  ;;  %v589_v20 = vor.u32 %v733_v11, %v588_v9  ;;  %v529_v21 = vor.u32 %v716_v12, %v526_v13 }
  0x14   :  { %235 = vmatpush.bf16.msra.mxu0 %v541_v56  ;;  %v715_v18 = vld [vmem:[%s1087_s2 + $0x4] sm:$0xf0]  ;;  %v25_v19 = vld [vmem:[%s1086_s1] sm:$0xff]  ;;  %v593_v25 = vor.u32 %v732_v14, %v590_v15  ;;  %v518_v26 = vld [vmem:[%s1087_s2 + $0x8] sm:$0xf0] }
  0x15   :  { %248 = vmatpush.bf16.msra.mxu1 %v605_v57  ;;  %261 = vmatpush.bf16.msra.mxu2 %v545_v58  ;;  %v580_v22 = vld [vmem:[%s1087_s2 + $0x80] sm:$0xf]  ;;  %v731_v23 = vld [vmem:[%s1087_s2 + $0x84] sm:$0xf0]  ;;  %v714_v24 = vld [vmem:[%s1087_s2 + $0x4] sm:$0xf] }
  0x16   :  { %274 = vmatpush.bf16.msra.mxu3 %v609_v62 }
  0x18   :  { %236 = vmatpush.bf16.msra.mxu0 %v533_v4 }
  0x19   :  { %249 = vmatpush.bf16.msra.mxu1 %v597_v5  ;;  %262 = vmatpush.bf16.msra.mxu2 %v537_v6 }
  0x1a   :  { %275 = vmatpush.bf16.msra.mxu3 %v601_v10 }
  0x1b   :  { %12 = vsyncpa [#allocation4], 0  ;;  %v730_v27 = vld [vmem:[%s1087_s2 + $0x84] sm:$0xf]  ;;  %v582_v28 = vld [vmem:[%s1087_s2 + $0x88] sm:$0xf0]  ;;  %v65_v29 = vunpack.c.l.b16 %v25_v19  ;;  %v517_v30 = vor.u32 %v715_v18, %v516_v17  ;;  %v66_v31 = vunpack.c.h.b16 %v25_v19  ;;  %v581_v32 = vor.u32 %v731_v23, %v580_v22 }
  0x1c   :  { %237 = vmatpush.bf16.msra.mxu0 %v525_v16  ;;  %v521_v33 = vor.u32 %v714_v24, %v518_v26  ;;  %v585_v34 = vor.u32 %v730_v27, %v582_v28  ;;  %v753_v35 = vld [vmem:[%s1089_s4 + $0x38] sm:$0xff]  ;;  %v752_v39 = vld [vmem:[%s1089_s4 + $0x30] sm:$0xff]  ;;  %v751_v41 = vld [vmem:[%s1089_s4 + $0x28] sm:$0xff]  ;;  %v288_v46 = vlaneseq  ;;  %v298_v53 = vstv %s1085_s0  ;;  %s794_s14 = smov [#allocation3]   ;;  %s505_s17 = sshll.u32 %s1091_s6, 4  ;;  %s506_s17 = int_to_ptr.hbm [resolvable:$true] %s505_s17 }
  0x1d   :  { %250 = vmatpush.bf16.msra.mxu1 %v589_v20  ;;  %263 = vmatpush.bf16.msra.mxu2 %v529_v21  ;;  %v67_v36 = vpack.c.b16 %v65_v29, %v65_v29  ;;  %v761_v37 = vld [vmem:[%s1089_s4 + $0x78] sm:$0xff]  ;;  %v68_v38 = vpack.c.b16 %v66_v31, %v66_v31  ;;  %v760_v40 = vld [vmem:[%s1089_s4 + $0x70] sm:$0xff]  ;;  %v759_v42 = vld [vmem:[%s1089_s4 + $0x68] sm:$0xff]  ;;  %s503_s15 = sshll.u32 %s794_s14, 4  ;;  %s504_s15 = int_to_ptr.vmem [resolvable:$true] %s503_s15 }
  0x1e   :  { %276 = vmatpush.bf16.msra.mxu3 %v593_v25  ;;  %v750_v43 = vld [vmem:[%s1089_s4 + $0x20] sm:$0xff]  ;;  %v749_v45 = vld [vmem:[%s1089_s4 + $0x18] sm:$0xff]  ;;  %v289_v47 = vshrl.u32 %v288_v46, 7  ;;  %v291_v48 = vand.u32 127, %v288_v46  ;;  %v748_v56 = vld [vmem:[%s1089_s4 + $0x10] sm:$0xff] }
  0x1f   :  { %v758_v44 = vld [vmem:[%s1089_s4 + $0x60] sm:$0xff]  ;;  %v757_v59 = vld [vmem:[%s1089_s4 + $0x58] sm:$0xff]  ;;  %v747_v60 = vld [vmem:[%s1089_s4 + $0x8] sm:$0xff] }
  0x20   :  { %238 = vmatpush.bf16.msra.mxu0 %v517_v30  ;;  %v293_v49 = vmul.u32 2654435769, %v289_v47  ;;  %v294_v50 = vmul.u32 2246822507, %v291_v48  ;;  %v292_v51 = vadd.s32 128, %v291_v48  ;;  %v756_v63 = vld [vmem:[%s1089_s4 + $0x50] sm:$0xff] }
  0x21   :  { %251 = vmatpush.bf16.msra.mxu1 %v581_v32  ;;  %264 = vmatpush.bf16.msra.mxu2 %v521_v33  ;;  %v746_v0 = vld [vmem:[%s1089_s4] sm:$0xff]  ;;  %v755_v3 = vld [vmem:[%s1089_s4 + $0x48] sm:$0xff] }
  0x22   :  { %277 = vmatpush.bf16.msra.mxu3 %v585_v34  ;;  %v296_v52 = vadd.s32 %v294_v50, %v293_v49  ;;  %v295_v54 = vmul.u32 2246822507, %v292_v51  ;;  %v754_v6 = vld [vmem:[%s1089_s4 + $0x40] sm:$0xff] }
  0x23   :  { %239 = vmatmul.bf16.vlgmr.msra.gmra.mxu0 %v67_v36  ;;  %v58_v13 = vld [vmem:[%s1088_s3] sm:$0x3] }
  0x24   :  { %461 = vmatpush.bf16.msrb.mxu0 %v753_v35  ;;  %252 = vmatmul.bf16.vlgmr.msra.gmra.mxu1 %v68_v38  ;;  %v299_v55 = vadd.s32 %v298_v53, %v296_v52  ;;  %v297_v57 = vadd.s32 %v295_v54, %v293_v49  ;;  %v60_v15 = vperm.slane %v58_v13, 0  ;;  %v61_v23 = vperm.slane %v58_v13, 1 }
  0x25   :  { %474 = vmatpush.bf16.msrb.mxu1 %v761_v37  ;;  %265 = vmatmul.bf16.vlgmr.msra.gmra.mxu2 %v67_v36 }
  0x26   :  { %278 = vmatmul.bf16.vlgmr.msra.gmra.mxu3 %v68_v38  ;;  %v301_v58 = vshrl.u32 %v299_v55, 16  ;;  %v300_v61 = vadd.s32 %v298_v53, %v297_v57 }
  0x28   :  { %462 = vmatpush.bf16.msrb.mxu0 %v752_v39  ;;  %v303_v62 = vxor.u32 %v301_v58, %v299_v55  ;;  %v302_v1 = vshrl.u32 %v300_v61, 16 }
  0x29   :  { %475 = vmatpush.bf16.msrb.mxu1 %v760_v40  ;;  %v763_v40 = vld [vmem:[%s1090_s5] ss:$0 sm:$0xff] }
  0x2a   :  { %v305_v2 = vmul.u32 2146121005, %v303_v62  ;;  %v304_v4 = vxor.u32 %v302_v1, %v300_v61 }
  0x2c   :  { %463 = vmatpush.bf16.msrb.mxu0 %v751_v41  ;;  %v307_v5 = vshrl.u32 %v305_v2, 15  ;;  %v306_v7 = vmul.u32 2146121005, %v304_v4 }
  0x2d   :  { %476 = vmatpush.bf16.msrb.mxu1 %v759_v42 }
  0x2e   :  { %v309_v8 = vxor.u32 %v307_v5, %v305_v2  ;;  %v308_v9 = vshrl.u32 %v306_v7, 15 }
  0x30   :  { %464 = vmatpush.bf16.msrb.mxu0 %v750_v43  ;;  %v311_v10 = vmul.u32 2221713035, %v309_v8  ;;  %v310_v11 = vxor.u32 %v308_v9, %v306_v7 }
  0x31   :  { %477 = vmatpush.bf16.msrb.mxu1 %v758_v44 }
  0x32   :  { %v313_v12 = vshrl.u32 %v311_v10, 16  ;;  %v312_v14 = vmul.u32 2221713035, %v310_v11 }
  0x34   :  { %465 = vmatpush.bf16.msrb.mxu0 %v749_v45  ;;  %v315_v16 = vxor.u32 %v313_v12, %v311_v10  ;;  %v314_v18 = vshrl.u32 %v312_v14, 16 }
  0x35   :  { %478 = vmatpush.bf16.msrb.mxu1 %v757_v59 }
  0x36   :  { %v642_v21 = vxor.u32 2147483648, %v315_v16  ;;  %v316_v24 = vxor.u32 %v314_v18, %v312_v14 }
  0x38   :  { %466 = vmatpush.bf16.msrb.mxu0 %v748_v56  ;;  %vm319_vm0 = vcmp.lt.s32.totalorder %v642_v21, 0  ;;  %v643_v31 = vxor.u32 2147483648, %v316_v24 }
  0x39   :  { %479 = vmatpush.bf16.msrb.mxu1 %v756_v63  ;;  %vm708_vm1 = vmpackc.low %vm319_vm0, %vm319_vm0 }
  0x3a   :  { %vm322_vm2 = vcmp.lt.s32.totalorder %v643_v31, 0 }
  0x3b   :  { %vm711_vm3 = vmpackc.low %vm322_vm2, %vm322_vm2 }
  0x3c   :  { %467 = vmatpush.bf16.msrb.mxu0 %v747_v60 }
  0x3d   :  { %480 = vmatpush.bf16.msrb.mxu1 %v755_v3 }
  0x40   :  { %468 = vmatpush.bf16.msrb.mxu0 %v746_v0 }
  0x41   :  { %481 = vmatpush.bf16.msrb.mxu1 %v754_v6 }
  0xa0   :  { %v240_v17 = vpop.f32.mrf.mxu0 }
  0xa1   :  { %v241_v19 = vadd.f32 %v240_v17, %v60_v15  ;;  %v253_v20 = vpop.f32.mrf.mxu1 }
  0xa3   :  { %v254_v22 = vadd.f32 %v253_v20, %v241_v19 }
  0xa5   :  { %v283_v25 = vmax.f32 %v254_v22, 0.0 }
  0xa7   :  { %v323_v26 = vmul.f32 2.0, %v283_v25 }
  0xa8   :  { %v266_v27 = vpop.f32.mrf.mxu2  ;;  %v242_v30 = vpop.f32.mrf.mxu0 }
  0xa9   :  { %v267_v28 = vadd.f32 %v266_v27, %v61_v23  ;;  %v279_v29 = vpop.f32.mrf.mxu3  ;;  %v709_v32 = vpack.c.bf16 %v323_v26, %v323_v26  ;;  %v255_v33 = vpop.f32.mrf.mxu1 }
  0xab   :  { %v280_v34 = vadd.f32 %v279_v29, %v267_v28  ;;  %710 = vmatmul.msk.bf16.vlgmr.msrb.gmra.mxu0 %vm708_vm1, %v709_v32 }
  0xad   :  { %v284_v35 = vmax.f32 %v280_v34, 0.0 }
  0xaf   :  { %v324_v36 = vmul.f32 2.0, %v284_v35 }
  0xb0   :  { %v268_v37 = vpop.f32.mrf.mxu2 }
  0xb1   :  { %v712_v38 = vpack.c.bf16 %v324_v36, %v324_v36  ;;  %v281_v39 = vpop.f32.mrf.mxu3 }
  0xb3   :  { %713 = vmatmul.msk.bf16.vlgmr.msrb.gmra.mxu1 %vm711_vm3, %v712_v38 }
 0x128   :  { %v470_v41 = vpop.f32.mrf.mxu0 }
 0x129   :  { %v471_v42 = vadd.f32 %v763_v40, %v470_v41 }
 0x130   :  { %v483_v43 = vpop.f32.mrf.mxu1  ;;  %v472_v45 = vpop.f32.mrf.mxu0 }
 0x131   :  { %v484_v44 = vadd.f32 %v483_v43, %v471_v42 }
 0x133   :  { %487 = vmax.xlane.f32.xlu0 %v484_v44 }
 0x138   :  { %v485_v46 = vpop.f32.mrf.mxu1 }
 0x1a6   :  { %v488_v47 = vpop.xlane.xlu0 %487 }
 0x1a7   :  { %v489_v48 = vsub.f32 %v484_v44, %v488_v47 }
 0x1a9   :  { %v490_v49 = vmul.f32 1.442695, %v489_v48 }
 0x1ab   :  { %764 = vpow2.f32 %v490_v49 }
 0x1b1   :  { %v765_v50 = vpop.eup %764 }
 0x1b2   :  { %492 = vadd.xlane.f32.xlu0 %v765_v50 }
 0x225   :  { %v493_v51 = vpop.xlane.xlu0 %492 }
 0x226   :  { %766 = vlog2.f32 %v493_v51 }
 0x22c   :  { %v767_v52 = vpop.eup %766 }
 0x22d   :  { %v495_v53 = vmul.f32 0.6931472, %v767_v52 }
 0x22f   :  { %v496_v54 = vsub.f32 %v489_v48, %v495_v53 }
 0x231   :  { %497 = vst [vmem:[#allocation3] sm:$0xff] %v496_v54 }
 0x232   :  { %508 = dma.vmem_to_hbm [thread:$0]  %s504_s15, 128, %s506_s17, [#allocation4]  }
 0x233   :  { %792 = dma.done.wait [#allocation4], 128  }
 0x234   :  { %793 = vsyncadd [#allocation4], 4294967168 }
 0x235   :  { %513 = vsyncpa [#allocation4], 1 }

</bundles_post_ra>
